<compile_context>
chip_gen: v5e
topology: v5e:2x2
jax: 0.10.0
libtpu: 0.0.40
codegen_flags: <defaults>
</compile_context>

<pallas_src>
import math

import jax
import jax.numpy as jnp
from jax.experimental import pallas as pl
from jax.experimental.pallas import tpu as pltpu


# --------------------------------------------------------------------------
# Padding / tile-selection helpers
# --------------------------------------------------------------------------
_VMEM_TILE_BUDGET = 24 * 1024 * 1024   # pipelined-buffer budget (v7x-safe)
_VMEM_LIMIT_BYTES = 48 * 1024 * 1024   # explicit scoped-VMEM limit


def _round_up(v, m):
    return ((v + m - 1) // m) * m


def _pad_axis_to(a, axis, target):
    pad = target - a.shape[axis]
    if pad == 0:
        return a
    widths = [(0, 0)] * a.ndim
    widths[axis] = (0, pad)
    return jnp.pad(a, widths)


def _tile_divisors(n, cap):
    """Multiples of 128 that divide n, ascending, capped at `cap`."""
    out = []
    t = 128
    lim = min(n, cap)
    while t <= lim:
        if n % t == 0:
            out.append(t)
        t += 128
    return out


def _select_agg_tiles(n_p, feat_p, adj_bytes, feat_bytes, out_bytes, budget):
    """Pick (TM, TK) for the adj @ feat kernel under a VMEM budget."""
    best = (128, 128)
    best_score = (-1, -1)
    for tk in _tile_divisors(n_p, 2048):
        for tm in _tile_divisors(n_p, 1024):
            foot = (
                2 * tm * tk * adj_bytes            # adj block, double buffered
                + 2 * tk * feat_p * feat_bytes     # feature block
                + 2 * tm * feat_p * out_bytes      # output block
                + tm * feat_p * 4                  # f32 accumulator scratch
            )
            if foot <= budget:
                score = (tm * tk, tk)
                if score > best_score:
                    best_score = score
                    best = (tm, tk)
    return best


# --------------------------------------------------------------------------
# Kernel bodies
# --------------------------------------------------------------------------
def _make_feature_kernel(has_bias, nkf):
    """out[b, i_tile, :] = x[b, i_tile, :] @ W (+ bias)."""

    def kernel(*args):
        if nkf == 1:
            # Single-dot variant: W is one full VMEM block, no reduction axis.
            if has_bias:
                x_ref, w_ref, b_ref, out_ref = args
            else:
                x_ref, w_ref, out_ref = args
                b_ref = None
            acc = jnp.dot(x_ref[0], w_ref[...], preferred_element_type=jnp.float32)
            if b_ref is not None:
                acc = acc + b_ref[...].astype(jnp.float32)
            out_ref[0] = acc.astype(out_ref.dtype)
        else:
            # k-tiled fallback for very large Fin x Fout.
            if has_bias:
                x_ref, w_ref, b_ref, out_ref, acc_ref = args
            else:
                x_ref, w_ref, out_ref, acc_ref = args
                b_ref = None
            k = pl.program_id(2)

            @pl.when(k == 0)
            def _():
                if b_ref is not None:
                    acc_ref[...] = jnp.broadcast_to(
                        b_ref[...].astype(jnp.float32), acc_ref.shape
                    )
                else:
                    acc_ref[...] = jnp.zeros_like(acc_ref)

            acc_ref[...] += jnp.dot(
                x_ref[0], w_ref[...], preferred_element_type=jnp.float32
            )

            @pl.when(k == pl.num_programs(2) - 1)
            def _():
                out_ref[0] = acc_ref[...].astype(out_ref.dtype)

    return kernel


def _make_aggregate_kernel(has_bias):
    """out[b, i_tile, :] = sum_k adj[b, i_tile, k_tile] @ feat[b, k_tile, :] (+ bias)."""

    def kernel(*args):
        if has_bias:
            adj_ref, s_ref, b_ref, out_ref, acc_ref = args
        else:
            adj_ref, s_ref, out_ref, acc_ref = args
            b_ref = None
        k = pl.program_id(2)

        @pl.when(k == 0)
        def _():
            if b_ref is not None:
                acc_ref[...] = jnp.broadcast_to(
                    b_ref[...].astype(jnp.float32), acc_ref.shape
                )
            else:
                acc_ref[...] = jnp.zeros_like(acc_ref)

        acc_ref[...] += jnp.dot(
            adj_ref[0], s_ref[0], preferred_element_type=jnp.float32
        )

        @pl.when(k == pl.num_programs(2) - 1)
        def _():
            out_ref[0] = acc_ref[...].astype(out_ref.dtype)

    return kernel


# --------------------------------------------------------------------------
# pallas_call wrappers
# --------------------------------------------------------------------------
def _feature_matmul_call(x_p, w_p, bias_p, out_dtype):
    """[B, n_p, fin_p] @ [fin_p, fout_p] (+ bias[1, fout_p]) -> [B, n_p, fout_p]."""
    B, n_p, fin_p = x_p.shape
    fout_p = w_p.shape[1]
    in_bytes = x_p.dtype.itemsize
    w_bytes = w_p.dtype.itemsize
    out_bytes = jnp.dtype(out_dtype).itemsize
    has_bias = bias_p is not None

    # Prefer full-W single block: W DMA'd once (constant index_map), no scratch.
    w_foot = 2 * fin_p * fout_p * w_bytes
    t_n = None
    for cand in _tile_divisors(n_p, 1024):
        foot = w_foot + 2 * cand * fin_p * in_bytes + 2 * cand * fout_p * out_bytes
        if foot <= _VMEM_TILE_BUDGET:
            t_n = cand
    if t_n is not None:
        t_kf = fin_p
    else:
        # Fallback: tile the Fin contraction (rare; huge Fin*Fout only).
        t_n = 128
        t_kf = 128
        for cand in _tile_divisors(fin_p, fin_p):
            foot = (
                2 * cand * fout_p * w_bytes
                + 2 * t_n * cand * in_bytes
                + 2 * t_n * fout_p * out_bytes
                + t_n * fout_p * 4
            )
            if foot <= _VMEM_TILE_BUDGET:
                t_kf = cand

    nm = n_p // t_n
    nkf = fin_p // t_kf

    if nkf == 1:
        grid = (B, nm)
        x_spec = pl.BlockSpec((1, t_n, fin_p), lambda b, i: (b, i, 0))
        w_spec = pl.BlockSpec((fin_p, fout_p), lambda b, i: (0, 0))
        b_spec = pl.BlockSpec((1, fout_p), lambda b, i: (0, 0))
        out_spec = pl.BlockSpec((1, t_n, fout_p), lambda b, i: (b, i, 0))
        scratch = []
        semantics = ("parallel", "parallel")
    else:
        grid = (B, nm, nkf)
        x_spec = pl.BlockSpec((1, t_n, t_kf), lambda b, i, k: (b, i, k))
        w_spec = pl.BlockSpec((t_kf, fout_p), lambda b, i, k: (k, 0))
        b_spec = pl.BlockSpec((1, fout_p), lambda b, i, k: (0, 0))
        out_spec = pl.BlockSpec((1, t_n, fout_p), lambda b, i, k: (b, i, 0))
        scratch = [pltpu.VMEM((t_n, fout_p), jnp.float32)]
        semantics = ("parallel", "parallel", "arbitrary")

    in_specs = [x_spec, w_spec]
    args = [x_p, w_p]
    if has_bias:
        in_specs.append(b_spec)
        args.append(bias_p)

    return pl.pallas_call(
        _make_feature_kernel(has_bias, nkf),
        out_shape=jax.ShapeDtypeStruct((B, n_p, fout_p), out_dtype),
        grid_spec=pltpu.PrefetchScalarGridSpec(
            num_scalar_prefetch=0,
            grid=grid,
            in_specs=in_specs,
            out_specs=out_spec,
            scratch_shapes=scratch,
        ),
        compiler_params=pltpu.CompilerParams(
            dimension_semantics=semantics,
            vmem_limit_bytes=_VMEM_LIMIT_BYTES,
        ),
        cost_estimate=pl.CostEstimate(
            flops=2 * B * n_p * fin_p * fout_p,
            transcendentals=0,
            bytes_accessed=int(
                x_p.size * in_bytes
                + w_p.size * w_bytes
                + B * n_p * fout_p * out_bytes
            ),
        ),
    )(*args)


def _aggregate_call(adj_p, feat_p_arr, bias_p, out_dtype):
    """[B, n_p, n_p] @ [B, n_p, F] (+ bias[1, F]) -> [B, n_p, F]."""
    B, n_p, _ = adj_p.shape
    F = feat_p_arr.shape[2]
    adj_bytes = adj_p.dtype.itemsize
    feat_bytes = feat_p_arr.dtype.itemsize
    out_bytes = jnp.dtype(out_dtype).itemsize
    has_bias = bias_p is not None

    tm, tk = _select_agg_tiles(
        n_p, F, adj_bytes, feat_bytes, out_bytes, _VMEM_TILE_BUDGET
    )
    nm = n_p // tm
    nk = n_p // tk

    in_specs = [
        pl.BlockSpec((1, tm, tk), lambda b, i, k: (b, i, k)),
        pl.BlockSpec((1, tk, F), lambda b, i, k: (b, k, 0)),
    ]
    args = [adj_p, feat_p_arr]
    if has_bias:
        in_specs.append(pl.BlockSpec((1, F), lambda b, i, k: (0, 0)))
        args.append(bias_p)

    return pl.pallas_call(
        _make_aggregate_kernel(has_bias),
        out_shape=jax.ShapeDtypeStruct((B, n_p, F), out_dtype),
        grid_spec=pltpu.PrefetchScalarGridSpec(
            num_scalar_prefetch=0,
            grid=(B, nm, nk),
            in_specs=in_specs,
            out_specs=pl.BlockSpec((1, tm, F), lambda b, i, k: (b, i, 0)),
            scratch_shapes=[pltpu.VMEM((tm, F), jnp.float32)],
        ),
        compiler_params=pltpu.CompilerParams(
            dimension_semantics=("parallel", "parallel", "arbitrary"),
            vmem_limit_bytes=_VMEM_LIMIT_BYTES,
        ),
        cost_estimate=pl.CostEstimate(
            flops=2 * B * n_p * n_p * F,
            transcendentals=0,
            bytes_accessed=int(
                adj_p.size * adj_bytes
                + nm * B * n_p * F * feat_bytes     # feat re-read per row tile
                + B * n_p * F * out_bytes
            ),
        ),
    )(*args)


# --------------------------------------------------------------------------
# Public forward
# --------------------------------------------------------------------------
def graph_convolution(x, adj, weight, bias=None, *, compute_dtype=jnp.bfloat16):
    """Pallas GraphConvolution forward.

    x:      [B, N, Fin]
    adj:    [B, N, N]
    weight: [Fin, Fout]
    bias:   optional [1, 1, Fout]
    compute_dtype: MXU-input / intermediate storage dtype (bf16 default; f32
        accumulation always; compute_dtype=jnp.float32 gives exact results
        matching the f32 reference — use for validation only).
    returns [B, N, Fout] in x.dtype
    """
    B, N, Fin = x.shape
    Fout = weight.shape[1]
    assert adj.shape == (B, N, N)
    assert weight.shape == (Fin, Fout)
    out_dtype = x.dtype

    # Layout-minimum padding (decoupled from block sizes).
    n_p = _round_up(N, 128)
    fin_p = _round_up(Fin, 128)
    fout_p = _round_up(Fout, 128)

    # Cast once in the wrapper (adj is the dominant HBM read; bf16 halves it).
    adj_p = _pad_axis_to(_pad_axis_to(adj, 1, n_p), 2, n_p).astype(compute_dtype)
    x_p = _pad_axis_to(_pad_axis_to(x, 1, n_p), 2, fin_p).astype(compute_dtype)
    w_p = _pad_axis_to(_pad_axis_to(weight, 0, fin_p), 1, fout_p).astype(compute_dtype)

    bias_p = None
    if bias is not None:
        bias_p = _pad_axis_to(
            bias.reshape(1, Fout).astype(jnp.float32), 1, fout_p
        )

    if Fout <= Fin:
        # out = adj @ (x @ W): the N^2 matmul sees width Fout (the smaller one).
        support = _feature_matmul_call(x_p, w_p, None, compute_dtype)
        out_p = _aggregate_call(adj_p, support, bias_p, out_dtype)
    else:
        # out = (adj @ x) @ W: the N^2 matmul sees width Fin (the smaller one).
        agg = _aggregate_call(adj_p, x_p, None, compute_dtype)
        out_p = _feature_matmul_call(agg, w_p, bias_p, out_dtype)

    # Strip node / feature padding.
    return out_p[:, :N, :Fout]


def init_params(key, in_features, out_features, use_bias=False):
    """Deterministic init mirroring GraphConvolution.reset_parameters."""
    stdv = 1.0 / math.sqrt(out_features)
    k_w, k_b = jax.random.split(key)
    weight = jax.random.uniform(
        k_w, (in_features, out_features), dtype=jnp.float32, minval=-stdv, maxval=stdv
    )
    bias = None
    if use_bias:
        bias = jax.random.uniform(
            k_b, (1, 1, out_features), dtype=jnp.float32, minval=-stdv, maxval=stdv
        )
    return weight, bias


if __name__ == "__main__":
    key = jax.random.PRNGKey(0)
    k_x, k_adj, k_p = jax.random.split(key, 3)

    B, N, Fin, Fout = 2, 16, 8, 32

    x = jax.random.normal(k_x, (B, N, Fin), dtype=jnp.float32)
    adj = jax.random.uniform(k_adj, (B, N, N), dtype=jnp.float32)

    # Default module config: bias=False.  Fout > Fin -> (adj @ x) @ W path.
    weight, bias = init_params(k_p, Fin, Fout, use_bias=False)
    ref = jnp.matmul(adj, jnp.matmul(x, weight))

    # Exact (f32 MXU) path — tight tolerance, validates tiling/padding/dispatch.
    out_f32 = jax.block_until_ready(
        graph_convolution(x, adj, weight, compute_dtype=jnp.float32)
    )
    assert out_f32.shape == (B, N, Fout)
    assert jnp.allclose(out_f32, ref, atol=1e-4, rtol=1e-4)

    # Default bf16-MXU / f32-accumulate path — looser tolerance (documented:
    # adj and the intermediate are rounded to bf16).
    out_bf16 = jax.block_until_ready(graph_convolution(x, adj, weight))
    assert jnp.allclose(out_bf16, ref, atol=5e-2, rtol=5e-2)

    # Bias path.
    weight_b, bias_b = init_params(k_p, Fin, Fout, use_bias=True)
    ref_b = jnp.matmul(adj, jnp.matmul(x, weight_b)) + bias_b
    out_b = jax.block_until_ready(
        graph_convolution(x, adj, weight_b, bias_b, compute_dtype=jnp.float32)
    )
    assert jnp.allclose(out_b, ref_b, atol=1e-4, rtol=1e-4)

    # Fout <= Fin -> adj @ (x @ W) path, with bias.
    weight2, bias2 = init_params(k_p, Fout, Fin, use_bias=True)   # 32 -> 8
    x2 = jax.random.normal(k_x, (B, N, Fout), dtype=jnp.float32)
    ref2 = jnp.matmul(adj, jnp.matmul(x2, weight2)) + bias2
    out2 = jax.block_until_ready(
        graph_convolution(x2, adj, weight2, bias2, compute_dtype=jnp.float32)
    )
    assert out2.shape == (B, N, Fin)
    assert jnp.allclose(out2, ref2, atol=1e-4, rtol=1e-4)

    print("KERNEL_OK")
</pallas_src>

<mosaic_0001>
module attributes {stable_mosaic.version = 11 : i64} {
  func.func @kernel(%arg0: i32, %arg1: i32, %arg2: i32, %arg3: memref<1x128x128xf32, #tpu.memory_space<vmem>>, %arg4: memref<1x128x128xf32, #tpu.memory_space<vmem>>, %arg5: memref<1x128x128xf32, #tpu.memory_space<vmem>>, %arg6: memref<128x128xf32, #tpu.memory_space<vmem>>) attributes {dimension_semantics = [#tpu.dimension_semantics<parallel>, #tpu.dimension_semantics<parallel>, #tpu.dimension_semantics<arbitrary>], iteration_bounds = array<i64: 2, 1, 1>, scalar_prefetch = 0 : i64, scratch_operands = 1 : i64, tpu.core_type = #tpu.core_type<tc>, window_params = [{transform_indices = @transform_0, window_bounds = array<i64: 1, 128, 128>}, {transform_indices = @transform_1, window_bounds = array<i64: 1, 128, 128>}, {transform_indices = @transform_2, window_bounds = array<i64: 1, 128, 128>}]} {
    %c0_i32 = arith.constant 0 : i32
    %0 = arith.cmpi eq, %arg2, %c0_i32 : i32
    %1 = arith.extui %0 : i1 to i32
    %c0_i32_0 = arith.constant 0 : i32
    %2 = arith.cmpi ne, %1, %c0_i32_0 : i32
    scf.if %2 {
      %cst_12 = arith.constant 0.000000e+00 : f32
      %14 = vector.broadcast %cst_12 : f32 to vector<128x128xf32>
      %c0_13 = arith.constant 0 : index
      %c0_14 = arith.constant 0 : index
      %15 = vector.load %arg6[%c0_13, %c0_14] : memref<128x128xf32, #tpu.memory_space<vmem>>, vector<128x128xf32>
      tpu.vector_store %arg6[%c0_13, %c0_14], %14 {strides = array<i32>} : memref<128x128xf32, #tpu.memory_space<vmem>>, vector<128x128xf32>,
    } else {
    }
    %c0 = arith.constant 0 : index
    %c0_1 = arith.constant 0 : index
    %3 = vector.load %arg6[%c0, %c0_1] : memref<128x128xf32, #tpu.memory_space<vmem>>, vector<128x128xf32>
    %c0_2 = arith.constant 0 : index
    %c0_3 = arith.constant 0 : index
    %c0_4 = arith.constant 0 : index
    %4 = vector.load %arg3[%c0_2, %c0_3, %c0_4] : memref<1x128x128xf32, #tpu.memory_space<vmem>>, vector<1x128x128xf32>
    %5 = vector.shape_cast %4 : vector<1x128x128xf32> to vector<128x128xf32>
    %c0_5 = arith.constant 0 : index
    %c0_6 = arith.constant 0 : index
    %c0_7 = arith.constant 0 : index
    %6 = vector.load %arg4[%c0_5, %c0_6, %c0_7] : memref<1x128x128xf32, #tpu.memory_space<vmem>>, vector<1x128x128xf32>
    %7 = vector.shape_cast %6 : vector<1x128x128xf32> to vector<128x128xf32>
    %cst = arith.constant dense<0.000000e+00> : vector<128x128xf32>
    %8 = tpu.matmul %5, %7, %cst {dimension_numbers = #tpu.dot_dimension_numbers<[1], [0], [0], [1], [0, 0, 1, 1], [], []>} : vector<128x128xf32>, vector<128x128xf32>, vector<128x128xf32> -> vector<128x128xf32>
    %9 = arith.addf %3, %8 : vector<128x128xf32>
    %c0_8 = arith.constant 0 : index
    %c0_9 = arith.constant 0 : index
    %10 = vector.load %arg6[%c0_8, %c0_9] : memref<128x128xf32, #tpu.memory_space<vmem>>, vector<128x128xf32>
    tpu.vector_store %arg6[%c0_8, %c0_9], %9 {strides = array<i32>} : memref<128x128xf32, #tpu.memory_space<vmem>>, vector<128x128xf32>,
    %c0_i32_10 = arith.constant 0 : i32
    %11 = arith.cmpi eq, %arg2, %c0_i32_10 : i32
    %12 = arith.extui %11 : i1 to i32
    %c0_i32_11 = arith.constant 0 : i32
    %13 = arith.cmpi ne, %12, %c0_i32_11 : i32
    scf.if %13 {
      %c0_12 = arith.constant 0 : index
      %c0_13 = arith.constant 0 : index
      %14 = vector.load %arg6[%c0_12, %c0_13] : memref<128x128xf32, #tpu.memory_space<vmem>>, vector<128x128xf32>
      %c0_14 = arith.constant 0 : index
      %c0_15 = arith.constant 0 : index
      %c0_16 = arith.constant 0 : index
      %15 = vector.load %arg5[%c0_14, %c0_15, %c0_16] : memref<1x128x128xf32, #tpu.memory_space<vmem>>, vector<1x128x128xf32>
      %16 = vector.shape_cast %15 : vector<1x128x128xf32> to vector<128x128xf32>
      %17 = vector.shape_cast %14 : vector<128x128xf32> to vector<1x128x128xf32>
      tpu.vector_store %arg5[%c0_14, %c0_15, %c0_16], %17 {strides = array<i32>} : memref<1x128x128xf32, #tpu.memory_space<vmem>>, vector<1x128x128xf32>,
    } else {
    }
    return
  }
  func.func @transform_0(%arg0: i32, %arg1: i32, %arg2: i32) -> (i32, i32, i32) {
    %c0_i32 = arith.constant 0 : i32
    return %arg0, %arg1, %arg2 : i32, i32, i32
  }
  func.func @transform_1(%arg0: i32, %arg1: i32, %arg2: i32) -> (i32, i32, i32) {
    %c0_i32 = arith.constant 0 : i32
    %c0_i32_0 = arith.constant 0 : i32
    return %arg0, %arg2, %c0_i32 : i32, i32, i32
  }
  func.func @transform_2(%arg0: i32, %arg1: i32, %arg2: i32) -> (i32, i32, i32) {
    %c0_i32 = arith.constant 0 : i32
    %c0_i32_0 = arith.constant 0 : i32
    return %arg0, %arg1, %c0_i32 : i32, i32, i32
  }
}

</mosaic_0001>

<bundles_post_ra>
// kernel: tpu_custom_call.1
= control target key start
LH: loop header
LB: loop body
LE: loop exit
PB: predicated region body
PF: predicated region fallthrough
CT: control target
= control target key end

     0   :  { %7 = vsyncpa [#allocation4], 0  ;;  %s1085_s0 = inlined_call_operand.hbm [shape: f32[2,128,128], index: 0, kind: input, shape index: {}]   ;;  %s1086_s1 = inlined_call_operand.hbm [shape: f32[2,128,128], index: 1, kind: input, shape index: {}]   ;;  %s1087_s2 = inlined_call_operand.hbm [shape: f32[2,128,128], index: 2, kind: output, shape index: {}]  }
   0x1   :  { %9 = vsyncpa [#allocation4 + $0x1], 0 }
   0x2   :  { %10 = vsyncpa [#allocation7], 0 }
   0x3   :  { %12 = vsyncpa [#allocation7 + $0x1], 0 }
   0x4   :  { %13 = vsyncpa [#allocation5], 0 }
   0x5   :  { %15 = vsyncpa [#allocation5 + $0x1], 0  ;;  %s884_s9 = smov 0   ;;  %s886_s10 = smov 0  }
   0x6   :  { %s888_s11 = smov 0   ;;  %s890_s12 = smov 0  }
   0x7   :  { %s892_s13 = smov 0   ;;  %s894_s14 = smov 0  }
   0x8 LB: > { %s576_s15 = sadd.s32 4294967295, %s863_s14   ;;  %s577_s16 = sadd.s32 4294967294, %s863_s14   ;;  %s863_s14 = sphi %s894_s14, %s21_s14   ;;  %s859_s13 = sphi %s892_s13, %s1097_s13   ;;  %s855_s12 = sphi %s890_s12, %s1096_s12   ;;  %s851_s11 = sphi %s888_s11, %s1095_s11   ;;  %s847_s10 = sphi %s886_s10, %s1094_s10   ;;  %s843_s9 = sphi %s884_s9, %s1093_s9  }
   0x9   : > { %s40_s17 = sadd.s32 1, %s859_s13  ;;  %s51_s18 = sadd.s32 1, %s851_s11 }
   0xa   : > { %p42_p0 = scmp.ge.s32.totalorder %s40_s17, 2  ;;  %p58_p1 = scmp.ne.s32.totalorder %s851_s11, %s847_s10 }
   0xb   : > { %p59_p2 = scmp.eq.s32.totalorder %s863_s14, 0  ;;  %p64_p3 = scmp.ne.s32.totalorder %s847_s10, %s843_s9 }
   0xc   : > { %s1099_s17 = smov (%p42_p0, %s40_s17), 0  ;;  %p65_p5 = scmp.eq.s32.totalorder %s576_s15, 0 }
   0xd   : > { %p925_p4 = por %p59_p2, %p58_p1  ;;  %s44_s20 = ssub.s32 %s859_s13, %s1099_s17 }
   0xe   : > { %p118_p6 = scmp.eq.s32.totalorder %s576_s15, 1  ;;  %p49_p7 = scmp.eq.s32.totalorder %s44_s20, 0 }
   0xf   : > { %p931_p8 = por %p65_p5, %p64_p3  ;;  %p124_p10 = scmp.eq.s32.totalorder %s577_s16, 1 }
  0x10   : > { %p935_p9 = por %p118_p6, %p58_p1  ;;  %p579_p12 = scmp.ge.s32.totalorder %s863_s14, 2 }
  0x11   : > { %s940_s23 = scalar_select %p49_p7, %s851_s11, %s51_s18  }
  0x12   : > { %p942_p11 = por %p124_p10, %p64_p3  ;;  %p663_p13 = scmp.lt.s32.totalorder %s863_s14, 2 }
  0x13   : > { %s949_s25 = sand.u32 1, %s851_s11   ;;  %s595_s27 = sshll.u32 %s859_s13, 7 }
  0x14   : > { %s580_s26 = sshll.u32 %s949_s25, 7  ;;  %s156_s30 = scalar_lea.hbm %s1085_s0, %s595_s27 }
  0x15   : > { %s148_s3 = scalar_lea.vmem [#allocation3], %s580_s26  ;;  %s157_s5 = sshll.u32 %s156_s30, 4  ;;  %s158_s5 = int_to_ptr.hbm [resolvable:$true] %s157_s5 }
  0x16   : > { %s159_s4 = sshll.u32 %s148_s3, 4  ;;  %p958_p0 = pnand %p663_p13, %p925_p4  ;;  %s160_s4 = int_to_ptr.vmem [resolvable:$true] %s159_s4 }
  0x17   : > { %p586_p1 = scmp.ge.s32.totalorder %s863_s14, 1  ;;  %s145_s7 = scalar_lea.sflag [#allocation4], %s949_s25 }
  0x18   : > { %s865_s8 = smov 128   ;;  %s866_s15 = smov 8  }
  0x19   : > { %655 = dma.hbm_to_vmem [thread:$0]  (!%p958_p0), %s158_s5, 2048, %s160_s4, %s145_s7, %s865_s8, %s865_s8, %s866_s15  }
  0x1a   : > { %p191_p2 = scmp.lt.s32.totalorder %s863_s14, 3  ;;  %s180_s20 = scalar_lea.hbm %s1086_s1, %s595_s27 }
  0x1b   : > { %s181_s28 = sshll.u32 %s180_s20, 4  ;;  %s173_s19 = scalar_lea.vmem [#allocation6], %s580_s26  ;;  %s182_s28 = int_to_ptr.hbm [resolvable:$true] %s181_s28 }
  0x1c   : > { %p192_p3 = pnand %p586_p1, %p191_p2  ;;  %s183_s29 = sshll.u32 %s173_s19, 4  ;;  %s184_s29 = int_to_ptr.vmem [resolvable:$true] %s183_s29 }
  0x1d   : > { %s170_s30 = scalar_lea.sflag [#allocation7], %s949_s25  ;;  %s974_s3 = sand.u32 (!%p192_p3), 1, %s847_s10  }
  0x1e   : > { %658 = dma.hbm_to_vmem [thread:$0]  (!%p958_p0), %s182_s28, 2048, %s184_s29, %s170_s30, %s865_s8, %s865_s8, %s866_s15  }
  0x1f   : > { %195 = sbr.rel (%p192_p3) target bundleno = 232 (0xe8), region = 28  ;;  %s977_s4 = sshll.u32 (!%p192_p3), %s974_s3, 7 }
  0x20   : > { %s198_s27 = scalar_lea.sflag (!%p192_p3), [#allocation4], %s974_s3  ;;  %s981_s5 = scalar_lea.vmem (!%p192_p3), [#allocation3], %s977_s4 }
  0x24   : > { %830 = dma.done.wait (%p931_p8), %s198_s27, 2048  }
  0x25   : > { %832 = vsyncadd (%p931_p8), %s198_s27, 4294965248  ;;  %s208_s25 = scalar_lea.sflag [#allocation7], %s974_s3  ;;  %s989_s26 = scalar_lea.vmem [#allocation6], %s977_s4 }
  0x26   : > { %834 = dma.done.wait (%p931_p8), %s208_s25, 2048  }
  0x27   : > { %836 = vsyncadd (%p931_p8), %s208_s25, 4294965248  ;;  %v308_v0 = vld [vmem:[%s989_s26 + $0x78] sm:$0xff]  ;;  %v307_v1 = vld [vmem:[%s989_s26 + $0x70] sm:$0xff]  ;;  %s1028_s21 = scalar_lea.vmem [#allocation8], %s977_s4  ;;  %s597_s6 = sshll.u32 %s855_s12, 7 }
  0x28   : > { %599 = vmatpush.msra.mxu2 %v308_v0  ;;  %600 = vmatpush.msra.mxu3 %v308_v0  ;;  %v306_v2 = vld [vmem:[%s989_s26 + $0x68] sm:$0xff]  ;;  %v305_v3 = vld [vmem:[%s989_s26 + $0x60] sm:$0xff]  ;;  %v304_v4 = vld [vmem:[%s989_s26 + $0x58] sm:$0xff]  ;;  %s455_s15 = scalar_lea.hbm %s1087_s2, %s597_s6  ;;  %s456_s16 = sshll.u32 %s1028_s21, 4  ;;  %s457_s16 = int_to_ptr.vmem [resolvable:$true] %s456_s16 }
  0x29   : > { %309 = vmatpush.msra.mxu0 %v308_v0  ;;  %598 = vmatpush.msra.mxu1 %v308_v0  ;;  %v303_v5 = vld [vmem:[%s989_s26 + $0x50] sm:$0xff]  ;;  %v302_v6 = vld [vmem:[%s989_s26 + $0x48] sm:$0xff]  ;;  %v301_v7 = vld [vmem:[%s989_s26 + $0x40] sm:$0xff]  ;;  %s458_s18 = sshll.u32 %s455_s15, 4  ;;  %s442_s12 = scalar_lea.sflag [#allocation5], %s974_s3  ;;  %s459_s18 = int_to_ptr.hbm [resolvable:$true] %s458_s18 }
  0x2a   : > { %602 = vmatpush.msra.mxu2 %v307_v1  ;;  %603 = vmatpush.msra.mxu3 %v307_v1  ;;  %v300_v8 = vld [vmem:[%s989_s26 + $0x38] sm:$0xff]  ;;  %v299_v9 = vld [vmem:[%s989_s26 + $0x30] sm:$0xff]  ;;  %v298_v10 = vld [vmem:[%s989_s26 + $0x28] sm:$0xff]  ;;  %s791_s20 = sshra.s32 %s459_s18, 4  ;;  %s797_s30 = scalar_lea.hbm %s1087_s2, 256  ;;  %s792_s20 = int_to_ptr.hbm [resolvable:$true] %s791_s20 }
  0x2b   : > { %310 = vmatpush.msra.mxu0 %v307_v1  ;;  %601 = vmatpush.msra.mxu1 %v307_v1  ;;  %v297_v11 = vld [vmem:[%s989_s26 + $0x20] sm:$0xff]  ;;  %v296_v12 = vld [vmem:[%s989_s26 + $0x18] sm:$0xff]  ;;  %v295_v13 = vld [vmem:[%s989_s26 + $0x10] sm:$0xff]  ;;  %s793_s28 = scalar_lea.hbm %s792_s20, 128  ;;  %p798_p7 = scmp.lt.s32.totalorder %s792_s20, %s1087_s2 }
  0x2c   : > { %605 = vmatpush.msra.mxu2 %v306_v2  ;;  %606 = vmatpush.msra.mxu3 %v306_v2  ;;  %v294_v14 = vld [vmem:[%s989_s26 + $0x8] sm:$0xff]  ;;  %v293_v15 = vld [vmem:[%s989_s26] sm:$0xff]  ;;  %v287_v24 = vld [vmem:[%s981_s5 + $0x50] sm:$0xff]  ;;  %p794_p4 = scmp.ne.s32.totalorder %s792_s20, %s793_s28  ;;  %p799_p8 = scmp.lt.s32.totalorder %s797_s30, %s793_s28 }
  0x2d   : > { %311 = vmatpush.msra.mxu0 %v306_v2  ;;  %604 = vmatpush.msra.mxu1 %v306_v2  ;;  %v285_v16 = vld [vmem:[%s981_s5 + $0x40] sm:$0xff]  ;;  %v286_v20 = vld [vmem:[%s981_s5 + $0x48] sm:$0xff]  ;;  %v291_v25 = vld [vmem:[%s981_s5 + $0x70] sm:$0xff] }
  0x2e   : > { %608 = vmatpush.msra.mxu2 %v305_v3  ;;  %609 = vmatpush.msra.mxu3 %v305_v3  ;;  %v289_v17 = vld [vmem:[%s981_s5 + $0x60] sm:$0xff]  ;;  %v290_v21 = vld [vmem:[%s981_s5 + $0x68] sm:$0xff]  ;;  %v279_v26 = vld [vmem:[%s981_s5 + $0x10] sm:$0xff]  ;;  %p795_p5 = pnand %p794_p4, %p935_p9  ;;  %p800_p10 = por %p799_p8, %p798_p7 }
  0x2f   : > { %312 = vmatpush.msra.mxu0 %v305_v3  ;;  %607 = vmatpush.msra.mxu1 %v305_v3  ;;  %v277_v18 = vld [vmem:[%s981_s5] sm:$0xff]  ;;  %v278_v22 = vld [vmem:[%s981_s5 + $0x8] sm:$0xff]  ;;  %v283_v27 = vld [vmem:[%s981_s5 + $0x30] sm:$0xff] }
  0x30   : > { %611 = vmatpush.msra.mxu2 %v304_v4  ;;  %612 = vmatpush.msra.mxu3 %v304_v4  ;;  %v281_v19 = vld [vmem:[%s981_s5 + $0x20] sm:$0xff]  ;;  %v282_v23 = vld [vmem:[%s981_s5 + $0x28] sm:$0xff]  ;;  %v288_v28 = vld [vmem:[%s981_s5 + $0x58] sm:$0xff]  ;;  %p796_p6 = pneg %p795_p5 }
  0x31   : > { %313 = vmatpush.msra.mxu0 %v304_v4  ;;  %610 = vmatpush.msra.mxu1 %v304_v4  ;;  %v292_v29 = vld [vmem:[%s981_s5 + $0x78] sm:$0xff] }
  0x32   : > { %614 = vmatpush.msra.mxu2 %v303_v5  ;;  %615 = vmatpush.msra.mxu3 %v303_v5  ;;  %v280_v30 = vld [vmem:[%s981_s5 + $0x18] sm:$0xff]  ;;  %p801_p13 = pnand %p800_p10, %p796_p6 }
  0x33   : > { %314 = vmatpush.msra.mxu0 %v303_v5  ;;  %613 = vmatpush.msra.mxu1 %v303_v5  ;;  %v284_v31 = vld [vmem:[%s981_s5 + $0x38] sm:$0xff] }
  0x34   : > { %617 = vmatpush.msra.mxu2 %v302_v6  ;;  %618 = vmatpush.msra.mxu3 %v302_v6 }
  0x35   : > { %315 = vmatpush.msra.mxu0 %v302_v6  ;;  %616 = vmatpush.msra.mxu1 %v302_v6 }
  0x36   : > { %620 = vmatpush.msra.mxu2 %v301_v7  ;;  %621 = vmatpush.msra.mxu3 %v301_v7 }
  0x37   : > { %316 = vmatpush.msra.mxu0 %v301_v7  ;;  %619 = vmatpush.msra.mxu1 %v301_v7 }
  0x38   : > { %623 = vmatpush.msra.mxu2 %v300_v8  ;;  %624 = vmatpush.msra.mxu3 %v300_v8 }
  0x39   : > { %317 = vmatpush.msra.mxu0 %v300_v8  ;;  %622 = vmatpush.msra.mxu1 %v300_v8 }
  0x3a   : > { %626 = vmatpush.msra.mxu2 %v299_v9  ;;  %627 = vmatpush.msra.mxu3 %v299_v9 }
  0x3b   : > { %318 = vmatpush.msra.mxu0 %v299_v9  ;;  %625 = vmatpush.msra.mxu1 %v299_v9 }
  0x3c   : > { %629 = vmatpush.msra.mxu2 %v298_v10  ;;  %630 = vmatpush.msra.mxu3 %v298_v10 }
  0x3d   : > { %319 = vmatpush.msra.mxu0 %v298_v10  ;;  %628 = vmatpush.msra.mxu1 %v298_v10 }
  0x3e   : > { %632 = vmatpush.msra.mxu2 %v297_v11  ;;  %633 = vmatpush.msra.mxu3 %v297_v11 }
  0x3f   : > { %320 = vmatpush.msra.mxu0 %v297_v11  ;;  %631 = vmatpush.msra.mxu1 %v297_v11 }
  0x40   : > { %635 = vmatpush.msra.mxu2 %v296_v12  ;;  %636 = vmatpush.msra.mxu3 %v296_v12 }
  0x41   : > { %321 = vmatpush.msra.mxu0 %v296_v12  ;;  %634 = vmatpush.msra.mxu1 %v296_v12 }
  0x42   : > { %638 = vmatpush.msra.mxu2 %v295_v13  ;;  %639 = vmatpush.msra.mxu3 %v295_v13 }
  0x43   : > { %322 = vmatpush.msra.mxu0 %v295_v13  ;;  %637 = vmatpush.msra.mxu1 %v295_v13 }
  0x44   : > { %641 = vmatpush.msra.mxu2 %v294_v14  ;;  %642 = vmatpush.msra.mxu3 %v294_v14 }
  0x45   : > { %323 = vmatpush.msra.mxu0 %v294_v14  ;;  %640 = vmatpush.msra.mxu1 %v294_v14 }
  0x46   : > { %644 = vmatpush.msra.mxu2 %v293_v15  ;;  %645 = vmatpush.msra.mxu3 %v293_v15 }
  0x47   : > { %349 = vmatmul.f32.vlgmr.msra.gmra.mxu2 %v285_v16  ;;  %361 = vmatmul.f32.vlgmr.msra.gmra.mxu3 %v289_v17 }
  0x48   : > { %324 = vmatpush.msra.mxu0 %v293_v15  ;;  %643 = vmatpush.msra.mxu1 %v293_v15 }
  0x49   : > { %325 = vmatmul.f32.vlgmr.msra.gmra.mxu0 %v277_v18  ;;  %337 = vmatmul.f32.vlgmr.msra.gmra.mxu1 %v281_v19 }
  0x4f   : > { %352 = vmatmul.f32.gmra.mxu2 %v286_v20  ;;  %364 = vmatmul.f32.gmra.mxu3 %v290_v21 }
  0x51   : > { %328 = vmatmul.f32.gmra.mxu0 %v278_v22  ;;  %340 = vmatmul.f32.gmra.mxu1 %v282_v23 }
  0x57   : > { %355 = vmatmul.f32.gmra.mxu2 %v287_v24  ;;  %367 = vmatmul.f32.gmra.mxu3 %v291_v25 }
  0x59   : > { %331 = vmatmul.f32.gmra.mxu0 %v279_v26  ;;  %343 = vmatmul.f32.gmra.mxu1 %v283_v27 }
  0x5f   : > { %358 = vmatmul.f32.gmra.mxu2 %v288_v28  ;;  %370 = vmatmul.f32.gmra.mxu3 %v292_v29 }
  0x61   : > { %334 = vmatmul.f32.gmra.mxu0 %v280_v30  ;;  %346 = vmatmul.f32.gmra.mxu1 %v284_v31 }
  0xc6   : > { %v326_v32 = vpop.f32.mrf.mxu0  ;;  %v338_v33 = vpop.f32.mrf.mxu1 }
  0xc7   : > { %425 = vst [vmem:[%s1028_s21] sm:$0xff] %v326_v32 }
  0xc8   : > { %429 = vst [vmem:[%s1028_s21 + $0x20] sm:$0xff] %v338_v33 }
  0xca   : > { %v350_v34 = vpop.f32.mrf.mxu2  ;;  %v362_v35 = vpop.f32.mrf.mxu3 }
  0xcb   : > { %433 = vst [vmem:[%s1028_s21 + $0x40] sm:$0xff] %v350_v34 }
  0xcc   : > { %437 = vst [vmem:[%s1028_s21 + $0x60] sm:$0xff] %v362_v35 }
  0xce   : > { %v329_v36 = vpop.f32.mrf.mxu0  ;;  %v341_v37 = vpop.f32.mrf.mxu1 }
  0xcf   : > { %426 = vst [vmem:[%s1028_s21 + $0x8] sm:$0xff] %v329_v36 }
  0xd0   : > { %430 = vst [vmem:[%s1028_s21 + $0x28] sm:$0xff] %v341_v37 }
  0xd2   : > { %v353_v38 = vpop.f32.mrf.mxu2  ;;  %v365_v39 = vpop.f32.mrf.mxu3 }
  0xd3   : > { %434 = vst [vmem:[%s1028_s21 + $0x48] sm:$0xff] %v353_v38 }
  0xd4   : > { %438 = vst [vmem:[%s1028_s21 + $0x68] sm:$0xff] %v365_v39 }
  0xd6   : > { %v332_v40 = vpop.f32.mrf.mxu0  ;;  %v344_v41 = vpop.f32.mrf.mxu1 }
  0xd7   : > { %427 = vst [vmem:[%s1028_s21 + $0x10] sm:$0xff] %v332_v40 }
  0xd8   : > { %431 = vst [vmem:[%s1028_s21 + $0x30] sm:$0xff] %v344_v41 }
  0xda   : > { %v356_v42 = vpop.f32.mrf.mxu2  ;;  %v368_v43 = vpop.f32.mrf.mxu3 }
  0xdb   : > { %435 = vst [vmem:[%s1028_s21 + $0x50] sm:$0xff] %v356_v42 }
  0xdc   : > { %439 = vst [vmem:[%s1028_s21 + $0x70] sm:$0xff] %v368_v43 }
  0xde   : > { %v335_v44 = vpop.f32.mrf.mxu0  ;;  %v347_v45 = vpop.f32.mrf.mxu1 }
  0xdf   : > { %428 = vst [vmem:[%s1028_s21 + $0x18] sm:$0xff] %v335_v44 }
  0xe0   : > { %432 = vst [vmem:[%s1028_s21 + $0x38] sm:$0xff] %v347_v45 }
  0xe2   : > { %v359_v46 = vpop.f32.mrf.mxu2  ;;  %v371_v47 = vpop.f32.mrf.mxu3 }
  0xe3   : > { %436 = vst [vmem:[%s1028_s21 + $0x58] sm:$0xff] %v359_v46 }
  0xe4   : > { %440 = vst [vmem:[%s1028_s21 + $0x78] sm:$0xff] %v371_v47 }
  0xe5   : > { %804 = shalt.err (!%p801_p13)
}
  0xe6   : > { %s867_s3 = smov 128   ;;  %s868_s5 = smov 8  }
  0xe7   : > { %650 = dma.vmem_to_hbm [thread:$0]  (%p935_p9), %s457_s16, 2048, %s459_s18, %s442_s12, %s867_s3, %s867_s3, %s868_s5  }
  0xe8 PF: > { %s473_s25 = sand.u32 1, %s843_s9   ;;  %p660_p0 = pnand %p579_p12, %p942_p11 }
  0xe9   : > { %s474_s26 = scalar_lea.sflag [#allocation5], %s473_s25 }
  0xea   : > { %p661_p1 = pneg %p660_p0 }
  0xec   : > { %838 = dma.done.wait (%p661_p1), %s474_s26, 2048  }
  0xed   : > { %840 = vsyncadd (%p661_p1), %s474_s26, 4294965248  ;;  %s21_s14 = sadd.s32 1, %s863_s14   ;;  %s1093_s9 = smov %s847_s10 }
  0xee   : > { %p18_p2 = scmp.ge.s32.totalorder %s21_s14, 4   ;;  %s1094_s10 = smov %s851_s11 }
  0xef   : > { %s1095_s11 = smov %s940_s23  ;;  %s1096_s12 = smov %s859_s13 }
  0xf0   : > { %s1097_s13 = smov %s1099_s17  ;;  %20 = sbr.rel (!%p18_p2) target bundleno = 8 (0x8), region = 94 }
  0xf5   :  { %480 = vsyncpa [#allocation4], 1 }
  0xf6   :  { %482 = vsyncpa [#allocation4 + $0x1], 1 }
  0xf7   :  { %483 = vsyncpa [#allocation7], 1 }
  0xf8   :  { %485 = vsyncpa [#allocation7 + $0x1], 1 }
  0xf9   :  { %486 = vsyncpa [#allocation5], 1 }
  0xfa   :  { %488 = vsyncpa [#allocation5 + $0x1], 1 }

</bundles_post_ra>
